<compile_context>
chip_gen: v7x
topology: tpu7x:2x2x1
jax: 0.10.0
libtpu: 0.0.40
codegen_flags: <defaults>
</compile_context>

<pallas_src>
import functools

import numpy as np
import jax
import jax.numpy as jnp
from jax.experimental import pallas as pl
from jax.experimental.pallas import tpu as pltpu


# ----------------------------------------------------------------------------
# Fused kernel: conv stem (K=27 matmul per maxpool quadrant) + BN + ReLU +
# 2x2 maxpool + global avgpool + fused fc/expert-head matmul + softmaxes.
# ----------------------------------------------------------------------------
def _moe_fused_kernel(xp_ref, wf_ref, wall_ref, vec_ref, out_ref, *,
                      q_rows, batch, hwq, num_super, num_items,
                      route_from_probs):
    cstem = wf_ref.shape[1]
    n_all = num_super + num_super * num_items

    scale = vec_ref[0:1, 0:cstem]                       # (1, Cstem) f32
    shift = vec_ref[1:2, 0:cstem]

    # ---- conv stem as 4 quadrant matmuls (K = KH*KW*Cin = 27), fused
    #      BN + ReLU, running elementwise max == 2x2/2 maxpool. Only one
    #      (q_rows, 27) bf16 operand slice is live at a time (no spills). ----
    wf = wf_ref[...]
    m = None
    for q in range(4):
        xq = xp_ref[q * q_rows:(q + 1) * q_rows, :]     # aligned static ref slice
        yq = jnp.dot(xq, wf, preferred_element_type=jnp.float32)
        yq = jnp.maximum(yq * scale + shift, 0.0)       # f32 VPU
        m = yq if m is None else jnp.maximum(m, yq)

    # ---- global average pool: per-batch sublane reduction (no dense pooling
    #      matrix, no MXU M=B matmul). ----
    inv = 1.0 / hwq
    feat = jnp.concatenate(
        [jnp.sum(m[b * hwq:(b + 1) * hwq, :], axis=0, keepdims=True) * inv
         for b in range(batch)], axis=0)                # (B, Cstem) f32

    # ---- resnet.fc and ALL expert heads in ONE MXU matmul ----
    all_logits = jnp.dot(feat.astype(jnp.bfloat16), wall_ref[...],
                         preferred_element_type=jnp.float32) + vec_ref[2:3, 0:n_all]
    sc_logits = all_logits[:, 0:num_super]              # (B, S)
    head_all = all_logits[:, num_super:n_all]           # (B, S*items)

    # ---- softmax(dim=1) over super classes ----
    sm = jnp.max(sc_logits, axis=-1, keepdims=True)
    se = jnp.exp(sc_logits - sm)
    sc_probs = se * pl.reciprocal(jnp.sum(se, axis=-1, keepdims=True), approx=True)

    # ---- routing one-hot ----
    if route_from_probs:
        # torch.argmax over the *flattened* softmax (meaningful for B == 1):
        # row 0 equals the flattened argmax when B == 1.
        row0 = sc_probs[0:1, :]
        ids = jax.lax.broadcasted_iota(jnp.int32, (1, num_super), 1)
        mx = jnp.max(row0, axis=-1, keepdims=True)
        first = jnp.min(jnp.where(row0 == mx, ids, num_super),
                        axis=-1, keepdims=True)
        onehot = (ids == first).astype(jnp.float32)     # (1, S)
    else:
        onehot = vec_ref[3:4, 0:num_super]              # (1, S), provided

    # ---- select routed expert logits from the fused head output ----
    it_logits = jnp.zeros((batch, num_items), jnp.float32)
    for s in range(num_super):
        it_logits = it_logits + onehot[:, s:s + 1] * \
            head_all[:, s * num_items:(s + 1) * num_items]
    im = jnp.max(it_logits, axis=-1, keepdims=True)
    ie = jnp.exp(it_logits - im)
    it_probs = ie * pl.reciprocal(jnp.sum(ie, axis=-1, keepdims=True), approx=True)

    # ---- single lane-dense full-width store ----
    pad = out_ref.shape[1] - 2 * (num_super + num_items)
    out_ref[...] = jnp.concatenate(
        [sc_logits, sc_probs, it_logits, it_probs,
         jnp.zeros((batch, pad), jnp.float32)], axis=1)


# ----------------------------------------------------------------------------
# Parameters (deterministic, synthetic — no checkpoint loading)
# ----------------------------------------------------------------------------
def init_params(key, *, cin=3, cstem=32, num_super=4, items_per_class=8):
    ks = jax.random.split(key, 7)
    conv_w = jax.random.normal(ks[0], (cstem, cin, 3, 3), jnp.float32) * 0.1  # torch (O,C,KH,KW)
    bn_gamma = jnp.ones((cstem,), jnp.float32)
    bn_beta = jnp.zeros((cstem,), jnp.float32)
    bn_mean = jax.random.normal(ks[1], (cstem,), jnp.float32) * 0.05
    bn_var = jnp.abs(jax.random.normal(ks[2], (cstem,), jnp.float32)) * 0.1 + 1.0
    fc_w = jax.random.normal(ks[3], (num_super, cstem), jnp.float32) * 0.1     # torch Linear (out,in)
    fc_b = jax.random.normal(ks[4], (num_super,), jnp.float32) * 0.01
    head_w = jax.random.normal(ks[5], (num_super, items_per_class, cstem), jnp.float32) * 0.1
    head_b = jax.random.normal(ks[6], (num_super, items_per_class), jnp.float32) * 0.01

    scale = bn_gamma / jnp.sqrt(bn_var + 1e-5)
    shift = bn_beta - bn_mean * scale

    # kernel layouts --------------------------------------------------------
    # conv weight flattened to (KH*KW*Cin, Cstem), index = kh*3*Cin + kw*Cin + c
    conv_wf = jnp.transpose(conv_w, (2, 3, 1, 0)).reshape(3 * 3 * cin, cstem)
    # fused fc + head RHS: (F, S + S*items); head block s is cols S + s*items ..
    head_flat = jnp.transpose(head_w, (2, 0, 1)).reshape(cstem, num_super * items_per_class)
    w_all = jnp.concatenate([fc_w.T, head_flat], axis=1)
    b_all = jnp.concatenate([fc_b, head_b.reshape(-1)], axis=0)

    return {
        # kernel-friendly layouts
        "conv_wf": conv_wf,                         # (27, Cstem)
        "bn_scale": scale,                          # (Cstem,)
        "bn_shift": shift,                          # (Cstem,)
        "w_all": w_all,                             # (Cstem, S + S*items)
        "b_all": b_all,                             # (S + S*items,)
        # reference layouts
        "fc_w": fc_w.T,                             # (F, S)
        "fc_b": fc_b.reshape(1, num_super),         # (1, S)
        "head_w": jnp.transpose(head_w, (0, 2, 1)),  # (S, F, items)
        "head_b": head_b.reshape(num_super, 1, items_per_class),
        "conv_w_torch": conv_w,
    }


# ----------------------------------------------------------------------------
# MoE forward (matches MoE.forward return signature)
# ----------------------------------------------------------------------------
def moe_forward(params, x_nchw, super_class=None):
    x = jnp.transpose(x_nchw, (0, 2, 3, 1)).astype(jnp.float32)  # NCHW -> NHWC
    B, H, W, cin = x.shape
    assert H % 2 == 0 and W % 2 == 0, "2x2/2 maxpool needs even H, W"
    Hh, Wh = H // 2, W // 2
    cstem = params["conv_wf"].shape[1]
    num_super = params["fc_w"].shape[1]
    num_items = params["head_w"].shape[2]
    n_all = num_super + num_super * num_items

    # --- build the K=27 im2col operand, split into the 4 maxpool quadrants
    #     (even/odd output row x even/odd output column).  Quadrant (di, dj)
    #     row (b, ih, jw) is the 3x3 patch of conv-output position
    #     (2*ih + di, 2*jw + dj). ---
    xpad = jnp.pad(x, ((0, 0), (1, 1), (1, 1), (0, 0)))          # (B, H+2, W+2, Cin)
    quads = []
    for di in (0, 1):
        for dj in (0, 1):
            taps = [xpad[:, di + kh:di + kh + H:2, dj + kw:dj + kw + W:2, :]
                    for kh in range(3) for kw in range(3)]       # 9 x (B, Hh, Wh, Cin)
            st = jnp.stack(taps, axis=3)                         # (B, Hh, Wh, 9, Cin)
            quads.append(st.reshape(B * Hh * Wh, 9 * cin))
    xp = jnp.concatenate(quads, axis=0).astype(jnp.bfloat16)     # (4*q_rows, 27)

    q_rows = B * Hh * Wh
    hwq = Hh * Wh
    assert q_rows % 16 == 0, "quadrant row count must be sublane-aligned (bf16)"
    assert hwq % 8 == 0, "per-batch row count must be sublane-aligned"
    assert cstem <= 128 and n_all <= 128

    # --- routing one-hot (or in-kernel argmax when super_class is None) ---
    if super_class is not None:
        onehot_row = jax.nn.one_hot(jnp.asarray(super_class, jnp.int32),
                                    num_super, dtype=jnp.float32).reshape(num_super)
        route_from_probs = False
    else:
        onehot_row = jnp.zeros((num_super,), jnp.float32)        # ignored; argmax in-kernel
        route_from_probs = True

    # --- pack all tiny vector params into one lane-dense (4, 128) block ---
    vec_pack = jnp.zeros((4, 128), jnp.float32)
    vec_pack = vec_pack.at[0, :cstem].set(params["bn_scale"])
    vec_pack = vec_pack.at[1, :cstem].set(params["bn_shift"])
    vec_pack = vec_pack.at[2, :n_all].set(params["b_all"])
    vec_pack = vec_pack.at[3, :num_super].set(onehot_row)

    wf = params["conv_wf"].astype(jnp.bfloat16)                  # (27, Cstem)
    w_all = params["w_all"].astype(jnp.bfloat16)                 # (Cstem, n_all)

    out_cols = 128
    kernel = functools.partial(
        _moe_fused_kernel, q_rows=q_rows, batch=B, hwq=hwq,
        num_super=num_super, num_items=num_items,
        route_from_probs=route_from_probs)

    packed = pl.pallas_call(
        kernel,
        out_shape=jax.ShapeDtypeStruct((B, out_cols), jnp.float32),
        grid=(1,),
        in_specs=[
            pl.BlockSpec(tuple(xp.shape), lambda i: (0, 0)),
            pl.BlockSpec(tuple(wf.shape), lambda i: (0, 0)),
            pl.BlockSpec(tuple(w_all.shape), lambda i: (0, 0)),
            pl.BlockSpec(tuple(vec_pack.shape), lambda i: (0, 0)),
        ],
        out_specs=pl.BlockSpec((B, out_cols), lambda i: (0, 0)),
        compiler_params=pltpu.CompilerParams(dimension_semantics=("arbitrary",)),
    )(xp, wf, w_all, vec_pack)

    sc_logits = packed[:, 0:num_super]
    sc_probs = packed[:, num_super:2 * num_super]
    it_logits = packed[:, 2 * num_super:2 * num_super + num_items]
    it_probs = packed[:, 2 * num_super + num_items:2 * num_super + 2 * num_items]
    return sc_logits, sc_probs, it_logits, it_probs


# ----------------------------------------------------------------------------
# Pure-JAX reference (same math, no Pallas) for correctness check
# ----------------------------------------------------------------------------
def reference_forward(params, x_nchw, super_class):
    x = jnp.transpose(x_nchw, (0, 2, 3, 1)).astype(jnp.float32)
    B = x.shape[0]
    w_hwio = jnp.transpose(params["conv_w_torch"], (2, 3, 1, 0))
    y = jax.lax.conv_general_dilated(x, w_hwio, (1, 1), "SAME",
                                     dimension_numbers=("NHWC", "HWIO", "NHWC"))
    y = y * params["bn_scale"].reshape(1, 1, 1, -1) + params["bn_shift"].reshape(1, 1, 1, -1)
    y = jnp.maximum(y, 0.0)
    mp = jnp.maximum(jnp.maximum(y[:, 0::2, 0::2, :], y[:, 0::2, 1::2, :]),
                     jnp.maximum(y[:, 1::2, 0::2, :], y[:, 1::2, 1::2, :]))
    C = mp.shape[-1]
    feat = jnp.mean(mp.reshape(B, -1, C), axis=1)
    logits = feat @ params["fc_w"] + params["fc_b"]
    probs = jax.nn.softmax(logits, axis=1)
    w_sel = params["head_w"][super_class]
    b_sel = params["head_b"][super_class]
    il = feat @ w_sel + b_sel
    io = jax.nn.softmax(il, axis=1)
    return logits, probs, il, io


if __name__ == "__main__":
    key = jax.random.PRNGKey(0)
    kx, kp = jax.random.split(key)

    B, Cin, H, W = 2, 3, 16, 16             # small synthetic shapes
    num_super, items_per_class = 4, 8       # len_item_classes = [8, 8, 8, 8]
    x = jax.random.normal(kx, (B, Cin, H, W), jnp.float32)   # NCHW, like PyTorch
    params = init_params(kp, cin=Cin, cstem=32,
                         num_super=num_super, items_per_class=items_per_class)

    super_class = 1   # routing label provided (the `super_class is not None` branch)
    outs = moe_forward(params, x, super_class=super_class)
    outs = jax.block_until_ready(outs)

    ref = reference_forward(params, x, super_class)
    for o, r in zip(outs, ref):
        assert o.shape == r.shape, (o.shape, r.shape)
        np.testing.assert_allclose(np.asarray(o), np.asarray(r), rtol=1e-2, atol=1e-2)

    print("KERNEL_OK")
</pallas_src>

<mosaic_0001>
module attributes {stable_mosaic.version = 11 : i64} {
  func.func @_moe_fused_kernel(%arg0: i32, %arg1: memref<512x27xbf16, #tpu.memory_space<vmem>>, %arg2: memref<27x32xbf16, #tpu.memory_space<vmem>>, %arg3: memref<32x36xbf16, #tpu.memory_space<vmem>>, %arg4: memref<4x128xf32, #tpu.memory_space<vmem>>, %arg5: memref<2x128xf32, #tpu.memory_space<vmem>>) attributes {dimension_semantics = [#tpu.dimension_semantics<arbitrary>], iteration_bounds = array<i64: 1>, scalar_prefetch = 0 : i64, scratch_operands = 0 : i64, tpu.core_type = #tpu.core_type<tc>, window_params = [{pipeline_mode = #tpu.pipeline_mode<synchronous>, transform_indices = @transform_0, window_bounds = array<i64: 512, 27>}, {pipeline_mode = #tpu.pipeline_mode<synchronous>, transform_indices = @transform_1, window_bounds = array<i64: 27, 32>}, {pipeline_mode = #tpu.pipeline_mode<synchronous>, transform_indices = @transform_2, window_bounds = array<i64: 32, 36>}, {pipeline_mode = #tpu.pipeline_mode<synchronous>, transform_indices = @transform_3, window_bounds = array<i64: 4, 128>}, {pipeline_mode = #tpu.pipeline_mode<synchronous>, transform_indices = @transform_4, window_bounds = array<i64: 2, 128>}]} {
    %c0 = arith.constant 0 : index
    %c0_0 = arith.constant 0 : index
    %0 = vector.load %arg4[%c0, %c0_0] : memref<4x128xf32, #tpu.memory_space<vmem>>, vector<1x32xf32>
    %c1 = arith.constant 1 : index
    %c0_1 = arith.constant 0 : index
    %1 = vector.load %arg4[%c1, %c0_1] : memref<4x128xf32, #tpu.memory_space<vmem>>, vector<1x32xf32>
    %c0_2 = arith.constant 0 : index
    %c0_3 = arith.constant 0 : index
    %2 = vector.load %arg2[%c0_2, %c0_3] : memref<27x32xbf16, #tpu.memory_space<vmem>>, vector<27x32xbf16>
    %c0_4 = arith.constant 0 : index
    %c0_5 = arith.constant 0 : index
    %3 = vector.load %arg1[%c0_4, %c0_5] : memref<512x27xbf16, #tpu.memory_space<vmem>>, vector<128x27xbf16>
    %cst = arith.constant dense<0.000000e+00> : vector<128x32xf32>
    %4 = tpu.matmul %3, %2, %cst {dimension_numbers = #tpu.dot_dimension_numbers<[1], [0], [0], [1], [0, 0, 1, 1], [], []>} : vector<128x27xbf16>, vector<27x32xbf16>, vector<128x32xf32> -> vector<128x32xf32>
    %5 = vector.broadcast %0 : vector<1x32xf32> to vector<128x32xf32>
    %6 = arith.mulf %4, %5 : vector<128x32xf32>
    %7 = vector.broadcast %1 : vector<1x32xf32> to vector<128x32xf32>
    %8 = arith.addf %6, %7 : vector<128x32xf32>
    %cst_6 = arith.constant 0.000000e+00 : f32
    %9 = vector.broadcast %cst_6 : f32 to vector<128x32xf32>
    %10 = arith.maximumf %8, %9 : vector<128x32xf32>
    %c128 = arith.constant 128 : index
    %c0_7 = arith.constant 0 : index
    %11 = vector.load %arg1[%c128, %c0_7] : memref<512x27xbf16, #tpu.memory_space<vmem>>, vector<128x27xbf16>
    %cst_8 = arith.constant dense<0.000000e+00> : vector<128x32xf32>
    %12 = tpu.matmul %11, %2, %cst_8 {dimension_numbers = #tpu.dot_dimension_numbers<[1], [0], [0], [1], [0, 0, 1, 1], [], []>} : vector<128x27xbf16>, vector<27x32xbf16>, vector<128x32xf32> -> vector<128x32xf32>
    %13 = vector.broadcast %0 : vector<1x32xf32> to vector<128x32xf32>
    %14 = arith.mulf %12, %13 : vector<128x32xf32>
    %15 = vector.broadcast %1 : vector<1x32xf32> to vector<128x32xf32>
    %16 = arith.addf %14, %15 : vector<128x32xf32>
    %cst_9 = arith.constant 0.000000e+00 : f32
    %17 = vector.broadcast %cst_9 : f32 to vector<128x32xf32>
    %18 = arith.maximumf %16, %17 : vector<128x32xf32>
    %19 = arith.maximumf %10, %18 : vector<128x32xf32>
    %c256 = arith.constant 256 : index
    %c0_10 = arith.constant 0 : index
    %20 = vector.load %arg1[%c256, %c0_10] : memref<512x27xbf16, #tpu.memory_space<vmem>>, vector<128x27xbf16>
    %cst_11 = arith.constant dense<0.000000e+00> : vector<128x32xf32>
    %21 = tpu.matmul %20, %2, %cst_11 {dimension_numbers = #tpu.dot_dimension_numbers<[1], [0], [0], [1], [0, 0, 1, 1], [], []>} : vector<128x27xbf16>, vector<27x32xbf16>, vector<128x32xf32> -> vector<128x32xf32>
    %22 = vector.broadcast %0 : vector<1x32xf32> to vector<128x32xf32>
    %23 = arith.mulf %21, %22 : vector<128x32xf32>
    %24 = vector.broadcast %1 : vector<1x32xf32> to vector<128x32xf32>
    %25 = arith.addf %23, %24 : vector<128x32xf32>
    %cst_12 = arith.constant 0.000000e+00 : f32
    %26 = vector.broadcast %cst_12 : f32 to vector<128x32xf32>
    %27 = arith.maximumf %25, %26 : vector<128x32xf32>
    %28 = arith.maximumf %19, %27 : vector<128x32xf32>
    %c384 = arith.constant 384 : index
    %c0_13 = arith.constant 0 : index
    %29 = vector.load %arg1[%c384, %c0_13] : memref<512x27xbf16, #tpu.memory_space<vmem>>, vector<128x27xbf16>
    %cst_14 = arith.constant dense<0.000000e+00> : vector<128x32xf32>
    %30 = tpu.matmul %29, %2, %cst_14 {dimension_numbers = #tpu.dot_dimension_numbers<[1], [0], [0], [1], [0, 0, 1, 1], [], []>} : vector<128x27xbf16>, vector<27x32xbf16>, vector<128x32xf32> -> vector<128x32xf32>
    %31 = vector.broadcast %0 : vector<1x32xf32> to vector<128x32xf32>
    %32 = arith.mulf %30, %31 : vector<128x32xf32>
    %33 = vector.broadcast %1 : vector<1x32xf32> to vector<128x32xf32>
    %34 = arith.addf %32, %33 : vector<128x32xf32>
    %cst_15 = arith.constant 0.000000e+00 : f32
    %35 = vector.broadcast %cst_15 : f32 to vector<128x32xf32>
    %36 = arith.maximumf %34, %35 : vector<128x32xf32>
    %37 = arith.maximumf %28, %36 : vector<128x32xf32>
    %38 = vector.extract_strided_slice %37 {offsets = [0, 0], sizes = [64, 32], strides = [1, 1]} : vector<128x32xf32> to vector<64x32xf32>
    %cst_16 = arith.constant dense<0.000000e+00> : vector<32xf32>
    %39 = vector.multi_reduction <add>, %38, %cst_16 [0] : vector<64x32xf32> to vector<32xf32>
    %40 = vector.shape_cast %39 : vector<32xf32> to vector<1x32xf32>
    %cst_17 = arith.constant 1.562500e-02 : f32
    %41 = vector.broadcast %cst_17 : f32 to vector<1x32xf32>
    %42 = arith.mulf %40, %41 : vector<1x32xf32>
    %43 = vector.extract_strided_slice %37 {offsets = [64, 0], sizes = [64, 32], strides = [1, 1]} : vector<128x32xf32> to vector<64x32xf32>
    %cst_18 = arith.constant dense<0.000000e+00> : vector<32xf32>
    %44 = vector.multi_reduction <add>, %43, %cst_18 [0] : vector<64x32xf32> to vector<32xf32>
    %45 = vector.shape_cast %44 : vector<32xf32> to vector<1x32xf32>
    %cst_19 = arith.constant 1.562500e-02 : f32
    %46 = vector.broadcast %cst_19 : f32 to vector<1x32xf32>
    %47 = arith.mulf %45, %46 : vector<1x32xf32>
    %48 = tpu.concatenate %42, %47 in 0 : vector<1x32xf32>, vector<1x32xf32> -> vector<2x32xf32>
    %49 = arith.truncf %48 : vector<2x32xf32> to vector<2x32xbf16>
    %c0_20 = arith.constant 0 : index
    %c0_21 = arith.constant 0 : index
    %50 = vector.load %arg3[%c0_20, %c0_21] : memref<32x36xbf16, #tpu.memory_space<vmem>>, vector<32x36xbf16>
    %cst_22 = arith.constant dense<0.000000e+00> : vector<2x36xf32>
    %51 = tpu.matmul %49, %50, %cst_22 {dimension_numbers = #tpu.dot_dimension_numbers<[1], [0], [0], [1], [0, 0, 1, 1], [], []>} : vector<2x32xbf16>, vector<32x36xbf16>, vector<2x36xf32> -> vector<2x36xf32>
    %c2 = arith.constant 2 : index
    %c0_23 = arith.constant 0 : index
    %52 = vector.load %arg4[%c2, %c0_23] : memref<4x128xf32, #tpu.memory_space<vmem>>, vector<1x36xf32>
    %53 = vector.broadcast %52 : vector<1x36xf32> to vector<2x36xf32>
    %54 = arith.addf %51, %53 : vector<2x36xf32>
    %55 = vector.extract_strided_slice %54 {offsets = [0, 0], sizes = [2, 4], strides = [1, 1]} : vector<2x36xf32> to vector<2x4xf32>
    %56 = vector.extract_strided_slice %54 {offsets = [0, 4], sizes = [2, 32], strides = [1, 1]} : vector<2x36xf32> to vector<2x32xf32>
    %cst_24 = arith.constant dense<0xFF800000> : vector<2xf32>
    %57 = vector.multi_reduction <maximumf>, %55, %cst_24 [1] : vector<2x4xf32> to vector<2xf32>
    %58 = vector.shape_cast %57 : vector<2xf32> to vector<2x1xf32>
    %59 = vector.broadcast %58 : vector<2x1xf32> to vector<2x4xf32>
    %60 = arith.subf %55, %59 : vector<2x4xf32>
    %61 = math.exp %60 : vector<2x4xf32>
    %cst_25 = arith.constant dense<0.000000e+00> : vector<2xf32>
    %62 = vector.multi_reduction <add>, %61, %cst_25 [1] : vector<2x4xf32> to vector<2xf32>
    %63 = vector.shape_cast %62 : vector<2xf32> to vector<2x1xf32>
    %64 = tpu.reciprocal %63 {approx = true} : vector<2x1xf32> -> vector<2x1xf32>
    %65 = vector.broadcast %64 : vector<2x1xf32> to vector<2x4xf32>
    %66 = arith.mulf %61, %65 : vector<2x4xf32>
    %c3 = arith.constant 3 : index
    %c0_26 = arith.constant 0 : index
    %67 = vector.load %arg4[%c3, %c0_26] : memref<4x128xf32, #tpu.memory_space<vmem>>, vector<1x4xf32>
    %cst_27 = arith.constant 0.000000e+00 : f32
    %68 = vector.broadcast %cst_27 : f32 to vector<2x8xf32>
    %69 = vector.extract_strided_slice %67 {offsets = [0, 0], sizes = [1, 1], strides = [1, 1]} : vector<1x4xf32> to vector<1x1xf32>
    %70 = vector.extract_strided_slice %56 {offsets = [0, 0], sizes = [2, 8], strides = [1, 1]} : vector<2x32xf32> to vector<2x8xf32>
    %71 = vector.broadcast %69 : vector<1x1xf32> to vector<2x8xf32>
    %72 = arith.mulf %71, %70 : vector<2x8xf32>
    %73 = arith.addf %68, %72 : vector<2x8xf32>
    %74 = vector.extract_strided_slice %67 {offsets = [0, 1], sizes = [1, 1], strides = [1, 1]} : vector<1x4xf32> to vector<1x1xf32>
    %75 = vector.extract_strided_slice %56 {offsets = [0, 8], sizes = [2, 8], strides = [1, 1]} : vector<2x32xf32> to vector<2x8xf32>
    %76 = vector.broadcast %74 : vector<1x1xf32> to vector<2x8xf32>
    %77 = arith.mulf %76, %75 : vector<2x8xf32>
    %78 = arith.addf %73, %77 : vector<2x8xf32>
    %79 = vector.extract_strided_slice %67 {offsets = [0, 2], sizes = [1, 1], strides = [1, 1]} : vector<1x4xf32> to vector<1x1xf32>
    %80 = vector.extract_strided_slice %56 {offsets = [0, 16], sizes = [2, 8], strides = [1, 1]} : vector<2x32xf32> to vector<2x8xf32>
    %81 = vector.broadcast %79 : vector<1x1xf32> to vector<2x8xf32>
    %82 = arith.mulf %81, %80 : vector<2x8xf32>
    %83 = arith.addf %78, %82 : vector<2x8xf32>
    %84 = vector.extract_strided_slice %67 {offsets = [0, 3], sizes = [1, 1], strides = [1, 1]} : vector<1x4xf32> to vector<1x1xf32>
    %85 = vector.extract_strided_slice %56 {offsets = [0, 24], sizes = [2, 8], strides = [1, 1]} : vector<2x32xf32> to vector<2x8xf32>
    %86 = vector.broadcast %84 : vector<1x1xf32> to vector<2x8xf32>
    %87 = arith.mulf %86, %85 : vector<2x8xf32>
    %88 = arith.addf %83, %87 : vector<2x8xf32>
    %cst_28 = arith.constant dense<0xFF800000> : vector<2xf32>
    %89 = vector.multi_reduction <maximumf>, %88, %cst_28 [1] : vector<2x8xf32> to vector<2xf32>
    %90 = vector.shape_cast %89 : vector<2xf32> to vector<2x1xf32>
    %91 = vector.broadcast %90 : vector<2x1xf32> to vector<2x8xf32>
    %92 = arith.subf %88, %91 : vector<2x8xf32>
    %93 = math.exp %92 : vector<2x8xf32>
    %cst_29 = arith.constant dense<0.000000e+00> : vector<2xf32>
    %94 = vector.multi_reduction <add>, %93, %cst_29 [1] : vector<2x8xf32> to vector<2xf32>
    %95 = vector.shape_cast %94 : vector<2xf32> to vector<2x1xf32>
    %96 = tpu.reciprocal %95 {approx = true} : vector<2x1xf32> -> vector<2x1xf32>
    %97 = vector.broadcast %96 : vector<2x1xf32> to vector<2x8xf32>
    %98 = arith.mulf %93, %97 : vector<2x8xf32>
    %cst_30 = arith.constant 0.000000e+00 : f32
    %99 = vector.broadcast %cst_30 : f32 to vector<2x104xf32>
    %100 = tpu.concatenate %55, %66, %88, %98, %99 in 1 : vector<2x4xf32>, vector<2x4xf32>, vector<2x8xf32>, vector<2x8xf32>, vector<2x104xf32> -> vector<2x128xf32>
    %c0_31 = arith.constant 0 : index
    %c0_32 = arith.constant 0 : index
    %101 = vector.load %arg5[%c0_31, %c0_32] : memref<2x128xf32, #tpu.memory_space<vmem>>, vector<2x128xf32>
    tpu.vector_store %arg5[%c0_31, %c0_32], %100 {strides = array<i32>} : memref<2x128xf32, #tpu.memory_space<vmem>>, vector<2x128xf32>,
    return
  }
  func.func @transform_0(%arg0: i32) -> (i32, i32) {
    %c0_i32 = arith.constant 0 : i32
    %c0_i32_0 = arith.constant 0 : i32
    %c0_i32_1 = arith.constant 0 : i32
    return %c0_i32, %c0_i32_0 : i32, i32
  }
  func.func @transform_1(%arg0: i32) -> (i32, i32) {
    %c0_i32 = arith.constant 0 : i32
    %c0_i32_0 = arith.constant 0 : i32
    %c0_i32_1 = arith.constant 0 : i32
    return %c0_i32, %c0_i32_0 : i32, i32
  }
  func.func @transform_2(%arg0: i32) -> (i32, i32) {
    %c0_i32 = arith.constant 0 : i32
    %c0_i32_0 = arith.constant 0 : i32
    %c0_i32_1 = arith.constant 0 : i32
    return %c0_i32, %c0_i32_0 : i32, i32
  }
  func.func @transform_3(%arg0: i32) -> (i32, i32) {
    %c0_i32 = arith.constant 0 : i32
    %c0_i32_0 = arith.constant 0 : i32
    %c0_i32_1 = arith.constant 0 : i32
    return %c0_i32, %c0_i32_0 : i32, i32
  }
  func.func @transform_4(%arg0: i32) -> (i32, i32) {
    %c0_i32 = arith.constant 0 : i32
    %c0_i32_0 = arith.constant 0 : i32
    %c0_i32_1 = arith.constant 0 : i32
    return %c0_i32, %c0_i32_0 : i32, i32
  }
}

</mosaic_0001>

<bundles_post_ra>
// kernel: tpu_custom_call.1
= control target key start
LH: loop header
LB: loop body
LE: loop exit
PB: predicated region body
PF: predicated region fallthrough
CT: control target
= control target key end

     0   :  { %vm117_vm0 = vcmask 1044480   ;;  %vm118_vm1 = vcmask 1045504   ;;  %v1508_v2 = vmov 65535   ;;  %vm92_vm2 = vcmask 220160   ;;  %s1918_s0 = inlined_call_operand.vmem [shape: bf16[512,27], index: 0, kind: input, shape index: {}]   ;;  %s1919_s1 = inlined_call_operand.vmem [shape: bf16[27,32], index: 1, kind: input, shape index: {}]   ;;  %s1920_s2 = inlined_call_operand.vmem [shape: bf16[32,36], index: 2, kind: input, shape index: {}]   ;;  %s1921_s3 = inlined_call_operand.vmem [shape: f32[4,128], index: 3, kind: input, shape index: {}]   ;;  %s1922_s4 = inlined_call_operand.hbm [shape: f32[2,128], index: 4, kind: output, shape index: {}]  }
   0x1   :  { %v1440_v0 = vld [vmem:[%s1919_s1] sm:$0xff]   ;;  %v1441_v1 = vld [vmem:[%s1919_s1 + $0x8] sm:$0x3f]   ;;  %v119_v3 = vsel %vm117_vm0, 4294967295, %v1508_v2  ;;  %v1446_v10 = vld [vmem:[%s1918_s0 + $0x10] sm:$0xff]  }
   0x2   :  { %1331 = vmatprep.subr.bf16.mxu0 %v1440_v0  ;;  %1351 = vmatprep.subr.bf16.mxu1 %v1440_v0  ;;  %v1442_v4 = vld [vmem:[%s1918_s0] sm:$0xff]   ;;  %v120_v6 = vsel %vm118_vm1, %v119_v3, 0  ;;  %v1444_v8 = vld [vmem:[%s1918_s0 + $0x8] sm:$0xff]   ;;  %v1447_v11 = vld [vmem:[%s1918_s0 + $0x50] sm:$0xff]  }
   0x3   :  { %1332 = vmatpush3.bf16.msra.mxu0 %v1440_v0  ;;  %1352 = vmatpush3.bf16.msra.mxu1 %v1440_v0  ;;  %v1443_v5 = vld [vmem:[%s1918_s0 + $0x40] sm:$0xff]   ;;  %v122_v7 = vand.u32 %v1441_v1, %v120_v6  ;;  %v1445_v9 = vld [vmem:[%s1918_s0 + $0x48] sm:$0xff]   ;;  %v1448_v12 = vld [vmem:[%s1918_s0 + $0x18] sm:$0xff]  }
   0x4   :  { %1335 = vmatprep.mubr.msk.bf16.mxu0 %vm92_vm2, %v1442_v4  ;;  %1355 = vmatprep.mubr.msk.bf16.mxu1 %vm92_vm2, %v1443_v5  ;;  %v1449_v13 = vld [vmem:[%s1918_s0 + $0x58] sm:$0xff]   ;;  %v1450_v14 = vld [vmem:[%s1918_s0 + $0x20] sm:$0xff]   ;;  %v1452_v16 = vld [vmem:[%s1918_s0 + $0x28] sm:$0xff]  }
   0x5   :  { %1333 = vmatprep.subr.bf16.mxu0 %v122_v7  ;;  %1353 = vmatprep.subr.bf16.mxu1 %v122_v7  ;;  %v1451_v15 = vld [vmem:[%s1918_s0 + $0x60] sm:$0xff]   ;;  %v1453_v17 = vld [vmem:[%s1918_s0 + $0x68] sm:$0xff]   ;;  %v1454_v18 = vld [vmem:[%s1918_s0 + $0x30] sm:$0xff]  }
   0x6   :  { %v1455_v19 = vld [vmem:[%s1918_s0 + $0x70] sm:$0xff]   ;;  %v1456_v20 = vld [vmem:[%s1918_s0 + $0x38] sm:$0xff]   ;;  %v1458_v22 = vld [vmem:[%s1918_s0 + $0x80] sm:$0xff]  }
   0x7   :  { %1334 = vmatpush3.bf16.msra.mxu0 %v122_v7  ;;  %1354 = vmatpush3.bf16.msra.mxu1 %v122_v7  ;;  %v1457_v21 = vld [vmem:[%s1918_s0 + $0x78] sm:$0xff]   ;;  %v1459_v23 = vld [vmem:[%s1918_s0 + $0xc0] sm:$0xff]  }
   0x8   :  { %1371 = vmatprep.subr.bf16.mxu0 %v1440_v0  ;;  %1391 = vmatprep.subr.bf16.mxu1 %v1440_v0 }
   0xa   :  { %1336 = vmatmul.mubr.msk.bf16.vlgmr.msra.gmra.mrb[0].mxu0 %vm92_vm2, %v1444_v8  ;;  %1356 = vmatmul.mubr.msk.bf16.vlgmr.msra.gmra.mrb[0].mxu1 %vm92_vm2, %v1445_v9 }
   0xb   :  { %1372 = vmatpush3.bf16.msra.mxu0 %v1440_v0  ;;  %1392 = vmatpush3.bf16.msra.mxu1 %v1440_v0 }
   0xc   :  { %1339 = vmatprep.mubr.msk.bf16.mxu0 %vm92_vm2, %v1446_v10  ;;  %1359 = vmatprep.mubr.msk.bf16.mxu1 %vm92_vm2, %v1447_v11 }
   0xd   :  { %1373 = vmatprep.subr.bf16.mxu0 %v122_v7  ;;  %1393 = vmatprep.subr.bf16.mxu1 %v122_v7 }
   0xf   :  { %1374 = vmatpush3.bf16.msra.mxu0 %v122_v7  ;;  %1394 = vmatpush3.bf16.msra.mxu1 %v122_v7 }
  0x12   :  { %1340 = vmatmul.mubr.msk.bf16.gmra.mrb[4].mxu0 %vm92_vm2, %v1448_v12  ;;  %1360 = vmatmul.mubr.msk.bf16.gmra.mrb[4].mxu1 %vm92_vm2, %v1449_v13 }
  0x13   :  { %1343 = vmatprep.mubr.msk.bf16.mxu0 %vm92_vm2, %v1450_v14  ;;  %1363 = vmatprep.mubr.msk.bf16.mxu1 %vm92_vm2, %v1451_v15 }
  0x1a   :  { %1344 = vmatmul.mubr.msk.bf16.gmra.mrb[8].mxu0 %vm92_vm2, %v1452_v16  ;;  %1364 = vmatmul.mubr.msk.bf16.gmra.mrb[8].mxu1 %vm92_vm2, %v1453_v17 }
  0x1b   :  { %1347 = vmatprep.mubr.msk.bf16.mxu0 %vm92_vm2, %v1454_v18  ;;  %1367 = vmatprep.mubr.msk.bf16.mxu1 %vm92_vm2, %v1455_v19 }
  0x22   :  { %1348 = vmatmul.mubr.msk.bf16.gmra.mrb[12].mxu0 %vm92_vm2, %v1456_v20  ;;  %1368 = vmatmul.mubr.msk.bf16.gmra.mrb[12].mxu1 %vm92_vm2, %v1457_v21 }
  0x23   :  { %1375 = vmatprep.mubr.msk.bf16.mxu0 %vm92_vm2, %v1458_v22  ;;  %1395 = vmatprep.mubr.msk.bf16.mxu1 %vm92_vm2, %v1459_v23 }
  0x24   :  { %9 = vsyncpa [#allocation3], 0  ;;  %v1460_v24 = vld [vmem:[%s1918_s0 + $0x88] sm:$0xff]   ;;  %v1462_v26 = vld [vmem:[%s1918_s0 + $0x90] sm:$0xff]   ;;  %v1509_v39 = vmov 0.0   ;;  %vm1510_vm3 = vmmov 0  }
  0x25   :  { %v1461_v25 = vld [vmem:[%s1918_s0 + $0xc8] sm:$0xff]   ;;  %v1463_v27 = vld [vmem:[%s1918_s0 + $0xd0] sm:$0xff]   ;;  %v1464_v28 = vld [vmem:[%s1918_s0 + $0x98] sm:$0xff]   ;;  %1411 = vmatprep.subr.bf16.mxu0 %v1509_v39  ;;  %s1511_s7 = smov 127   ;;  %s1512_s8 = smov 125   ;;  %vm1000_vm4 = vcmask 261120  }
  0x26   :  { %v1465_v29 = vld [vmem:[%s1918_s0 + $0xd8] sm:$0xff]   ;;  %v1466_v30 = vld [vmem:[%s1918_s0 + $0xa0] sm:$0xff]   ;;  %v1468_v32 = vld [vmem:[%s1918_s0 + $0xa8] sm:$0xff]   ;;  %s1513_s9 = smov 126   ;;  %vm1045_vm5 = vcmask 1040384   ;;  %s1514_s19 = smov 112  }
  0x27   :  { %v1467_v31 = vld [vmem:[%s1918_s0 + $0xe0] sm:$0xff]   ;;  %v1469_v33 = vld [vmem:[%s1918_s0 + $0xe8] sm:$0xff]   ;;  %v1470_v34 = vld [vmem:[%s1918_s0 + $0xb0] sm:$0xff]   ;;  %s1515_s20 = smov 120   ;;  %vm1112_vm6 = vcmask 25600   ;;  %vm1164_vm7 = vcmask 91168  }
  0x28   :  { %v1471_v35 = vld [vmem:[%s1918_s0 + $0xf0] sm:$0xff]   ;;  %v1472_v36 = vld [vmem:[%s1918_s0 + $0xb8] sm:$0xff]   ;;  %v1474_v38 = vld [vmem:[%s1920_s2] sm:$0xff]   ;;  %s1517_s21 = smov 124   ;;  %s1518_s22 = smov 4   ;;  %vm1175_vm8 = vcmask 58368  }
  0x29   :  { %v1473_v37 = vld [vmem:[%s1918_s0 + $0xf8] sm:$0xff]   ;;  %v1475_v40 = vld [vmem:[%s1920_s2 + $0x8] sm:$0xff]   ;;  %v1124_v41 = vld [vmem:[%s1921_s3 + $0x3] sm:$0x1]  ;;  %s1519_s1 = smov 12   ;;  %vm1193_vm9 = vcmask 31744  }
  0x2a   :  { %1376 = vmatmul.mubr.msk.bf16.vlgmr.msra.gmra.mrb[16].mxu0 %vm92_vm2, %v1460_v24  ;;  %1396 = vmatmul.mubr.msk.bf16.vlgmr.msra.gmra.mrb[16].mxu1 %vm92_vm2, %v1461_v25  ;;  %1419 = vpush %v1124_v41  ;;  %v1692_v42 = vld [vmem:[%s1921_s3] ss:$0 sm:$0xff]  ;;  %v1697_v43 = vld [vmem:[%s1921_s3 + $0x1] ss:$0 sm:$0xff]  ;;  %vm1195_vm10 = vcmask 64512   ;;  %vm1197_vm11 = vcmask 130048  }
  0x2b   :  { %1379 = vmatprep.mubr.msk.bf16.mxu0 %vm92_vm2, %v1462_v26  ;;  %1399 = vmatprep.mubr.msk.bf16.mxu1 %vm92_vm2, %v1463_v27  ;;  %s1520_s23 = smov [#allocation2]   ;;  %vm1199_vm12 = vcmask 195584  }
  0x2c   :  { %1412 = vmatpush3.bf16.msra.mxu0 %v1474_v38  ;;  %1131 = vrot.lane.b32.xlu0 %v1124_v41, %s1511_s7  ;;  %s1208_s24 = sshll.u32 %s1520_s23, 4  ;;  %s1209_s24 = int_to_ptr.vmem [resolvable:$true] %s1208_s24 }
  0x2d   :  { %1413 = vmatprep.subr.bf16.mxu0 %v1509_v39  ;;  %1153 = vrot.lane.b32.xlu1 %v1124_v41, %s1512_s8  ;;  %s1484_s25 = scalar_lea.vmem %s1209_s24, 32  ;;  %p1489_p1 = scmp.lt.s32.totalorder %s1209_s24, %s1209_s24 }
  0x2e   :  { %p1485_p0 = scmp.ne.s32.totalorder %s1209_s24, %s1484_s25  ;;  %p1490_p2 = scmp.lt.s32.totalorder %s1484_s25, %s1484_s25 }
  0x30   :  { %1414 = vmatpush3.bf16.msra.mxu0 %v1475_v40  ;;  %1142 = vrot.lane.b32.xlu0 %v1124_v41, %s1513_s9  ;;  %p1491_p3 = por %p1490_p2, %p1489_p1 }
  0x32   :  { %1380 = vmatmul.mubr.msk.bf16.gmra.mrb[20].mxu0 %vm92_vm2, %v1464_v28  ;;  %1400 = vmatmul.mubr.msk.bf16.gmra.mrb[20].mxu1 %vm92_vm2, %v1465_v29  ;;  %p1492_p4 = pnand %p1491_p3, %p1485_p0 }
  0x33   :  { %1383 = vmatprep.mubr.msk.bf16.mxu0 %vm92_vm2, %v1466_v30  ;;  %1403 = vmatprep.mubr.msk.bf16.mxu1 %vm92_vm2, %v1467_v31 }
  0x3a   :  { %1384 = vmatmul.mubr.msk.bf16.gmra.mrb[24].mxu0 %vm92_vm2, %v1468_v32  ;;  %1404 = vmatmul.mubr.msk.bf16.gmra.mrb[24].mxu1 %vm92_vm2, %v1469_v33 }
  0x3b   :  { %1387 = vmatprep.mubr.msk.bf16.mxu0 %vm92_vm2, %v1470_v34  ;;  %1407 = vmatprep.mubr.msk.bf16.mxu1 %vm92_vm2, %v1471_v35 }
  0x42   :  { %1388 = vmatmul.mubr.msk.bf16.gmra.mrb[28].mxu0 %vm92_vm2, %v1472_v36  ;;  %1408 = vmatmul.mubr.msk.bf16.gmra.mrb[28].mxu1 %vm92_vm2, %v1473_v37 }
  0x43   :  { %1415 = vmatprep.mubr.msk.bf16.mxu0 %vm1510_vm3, %v1509_v39 }
  0x5b   :  { %s1420_s13 = spop %1419 }
  0xdd   :  { %v1337_v44 = vpop.f32.mrb[0].mxu0  ;;  %v1357_v45 = vpop.f32.mrb[0].mxu1 }
  0xde   :  { %v227_v46 = vmul.f32 %v1337_v44, %v1692_v42  ;;  %v456_v47 = vmul.f32 %v1357_v45, %v1692_v42  ;;  %v158_v48 = vpop.f32.mrb[1].mxu0  ;;  %v391_v49 = vpop.f32.mrb[1].mxu1 }
  0xdf   :  { %v225_v50 = vmul.f32 %v1692_v42, %v158_v48  ;;  %v454_v51 = vmul.f32 %v1692_v42, %v391_v49  ;;  %v1338_v52 = vpop.f32.mrb[2].mxu0  ;;  %v1358_v53 = vpop.f32.mrb[2].mxu1 }
  0xe0   :  { %v247_v54 = vadd.f32 %v1697_v43, %v227_v46  ;;  %v472_v55 = vadd.f32 %v1697_v43, %v456_v47  ;;  %v228_v56 = vmul.f32 %v1338_v52, %v1692_v42  ;;  %v457_v57 = vmul.f32 %v1358_v53, %v1692_v42  ;;  %v161_v58 = vpop.f32.mrb[3].mxu0  ;;  %v394_v59 = vpop.f32.mrb[3].mxu1 }
  0xe1   :  { %v245_v60 = vadd.f32 %v1697_v43, %v225_v50  ;;  %v470_v61 = vadd.f32 %v1697_v43, %v454_v51  ;;  %v226_v62 = vmul.f32 %v1692_v42, %v161_v58  ;;  %v455_v63 = vmul.f32 %v1692_v42, %v394_v59 }
  0xe2   :  { %v263_v0 = vmax.f32 %v247_v54, 0.0  ;;  %v488_v1 = vmax.f32 %v472_v55, 0.0  ;;  %v248_v2 = vadd.f32 %v1697_v43, %v228_v56  ;;  %v473_v3 = vadd.f32 %v1697_v43, %v457_v57 }
  0xe3   :  { %v261_v4 = vmax.f32 %v245_v60, 0.0  ;;  %v486_v5 = vmax.f32 %v470_v61, 0.0  ;;  %v246_v6 = vadd.f32 %v1697_v43, %v226_v62  ;;  %v471_v7 = vadd.f32 %v1697_v43, %v455_v63 }
  0xe4   :  { %v1715_v8 = vmax.f32 %v263_v0, %v488_v1  ;;  %v264_v9 = vmax.f32 %v248_v2, 0.0  ;;  %v489_v10 = vmax.f32 %v473_v3, 0.0 }
  0xe5   :  { %v1717_v11 = vmax.f32 %v261_v4, %v486_v5  ;;  %v262_v12 = vmax.f32 %v246_v6, 0.0  ;;  %v487_v13 = vmax.f32 %v471_v7, 0.0  ;;  %v1341_v14 = vpop.f32.mrb[4].mxu0  ;;  %v1361_v15 = vpop.f32.mrb[4].mxu1 }
  0xe6   :  { %v1719_v16 = vmax.f32 %v264_v9, %v489_v10  ;;  %v231_v17 = vmul.f32 %v1341_v14, %v1692_v42  ;;  %v460_v18 = vmul.f32 %v1361_v15, %v1692_v42  ;;  %v174_v19 = vpop.f32.mrb[5].mxu0  ;;  %v407_v20 = vpop.f32.mrb[5].mxu1 }
  0xe7   :  { %v1723_v21 = vmax.f32 %v262_v12, %v487_v13  ;;  %v229_v22 = vmul.f32 %v1692_v42, %v174_v19  ;;  %v458_v23 = vmul.f32 %v1692_v42, %v407_v20  ;;  %v1342_v24 = vpop.f32.mrb[6].mxu0  ;;  %v1362_v25 = vpop.f32.mrb[6].mxu1 }
  0xe8   :  { %v251_v26 = vadd.f32 %v1697_v43, %v231_v17  ;;  %v476_v27 = vadd.f32 %v1697_v43, %v460_v18  ;;  %v232_v28 = vmul.f32 %v1342_v24, %v1692_v42  ;;  %v461_v29 = vmul.f32 %v1362_v25, %v1692_v42  ;;  %v177_v30 = vpop.f32.mrb[7].mxu0  ;;  %v410_v31 = vpop.f32.mrb[7].mxu1 }
  0xe9   :  { %v249_v32 = vadd.f32 %v1697_v43, %v229_v22  ;;  %v474_v33 = vadd.f32 %v1697_v43, %v458_v23  ;;  %v230_v34 = vmul.f32 %v1692_v42, %v177_v30  ;;  %v459_v35 = vmul.f32 %v1692_v42, %v410_v31 }
  0xea   :  { %v267_v36 = vmax.f32 %v251_v26, 0.0  ;;  %v492_v37 = vmax.f32 %v476_v27, 0.0  ;;  %v252_v38 = vadd.f32 %v1697_v43, %v232_v28  ;;  %v477_v39 = vadd.f32 %v1697_v43, %v461_v29 }
  0xeb   :  { %v265_v40 = vmax.f32 %v249_v32, 0.0  ;;  %v490_v41 = vmax.f32 %v474_v33, 0.0  ;;  %v250_v44 = vadd.f32 %v1697_v43, %v230_v34  ;;  %v475_v45 = vadd.f32 %v1697_v43, %v459_v35 }
  0xec   :  { %v1739_v46 = vmax.f32 %v267_v36, %v492_v37  ;;  %v268_v47 = vmax.f32 %v252_v38, 0.0  ;;  %v493_v48 = vmax.f32 %v477_v39, 0.0 }
  0xed   :  { %v1741_v49 = vmax.f32 %v265_v40, %v490_v41  ;;  %v266_v50 = vmax.f32 %v250_v44, 0.0  ;;  %v491_v51 = vmax.f32 %v475_v45, 0.0  ;;  %v1345_v52 = vpop.f32.mrb[8].mxu0  ;;  %v1365_v53 = vpop.f32.mrb[8].mxu1 }
  0xee   :  { %v1743_v54 = vmax.f32 %v268_v47, %v493_v48  ;;  %v235_v55 = vmul.f32 %v1345_v52, %v1692_v42  ;;  %v464_v56 = vmul.f32 %v1365_v53, %v1692_v42  ;;  %v190_v57 = vpop.f32.mrb[9].mxu0  ;;  %v423_v58 = vpop.f32.mrb[9].mxu1 }
  0xef   :  { %v1747_v59 = vmax.f32 %v266_v50, %v491_v51  ;;  %v233_v60 = vmul.f32 %v1692_v42, %v190_v57  ;;  %v462_v61 = vmul.f32 %v1692_v42, %v423_v58  ;;  %v1346_v62 = vpop.f32.mrb[10].mxu0  ;;  %v1366_v63 = vpop.f32.mrb[10].mxu1 }
  0xf0   :  { %v255_v0 = vadd.f32 %v1697_v43, %v235_v55  ;;  %v480_v1 = vadd.f32 %v1697_v43, %v464_v56  ;;  %v236_v2 = vmul.f32 %v1346_v62, %v1692_v42  ;;  %v465_v3 = vmul.f32 %v1366_v63, %v1692_v42  ;;  %v193_v4 = vpop.f32.mrb[11].mxu0  ;;  %v426_v5 = vpop.f32.mrb[11].mxu1 }
  0xf1   :  { %v253_v6 = vadd.f32 %v1697_v43, %v233_v60  ;;  %v478_v7 = vadd.f32 %v1697_v43, %v462_v61  ;;  %v234_v9 = vmul.f32 %v1692_v42, %v193_v4  ;;  %v463_v10 = vmul.f32 %v1692_v42, %v426_v5 }
  0xf2   :  { %v271_v12 = vmax.f32 %v255_v0, 0.0  ;;  %v496_v13 = vmax.f32 %v480_v1, 0.0  ;;  %v256_v14 = vadd.f32 %v1697_v43, %v236_v2  ;;  %v481_v15 = vadd.f32 %v1697_v43, %v465_v3 }
  0xf3   :  { %v269_v17 = vmax.f32 %v253_v6, 0.0  ;;  %v494_v18 = vmax.f32 %v478_v7, 0.0  ;;  %v254_v19 = vadd.f32 %v1697_v43, %v234_v9  ;;  %v479_v20 = vadd.f32 %v1697_v43, %v463_v10 }
  0xf4   :  { %v1763_v22 = vmax.f32 %v271_v12, %v496_v13  ;;  %v272_v23 = vmax.f32 %v256_v14, 0.0  ;;  %v497_v24 = vmax.f32 %v481_v15, 0.0 }
  0xf5   :  { %v1765_v25 = vmax.f32 %v269_v17, %v494_v18  ;;  %v270_v26 = vmax.f32 %v254_v19, 0.0  ;;  %v495_v27 = vmax.f32 %v479_v20, 0.0  ;;  %v1349_v28 = vpop.f32.mrb[12].mxu0  ;;  %v1369_v29 = vpop.f32.mrb[12].mxu1 }
  0xf6   :  { %v1767_v30 = vmax.f32 %v272_v23, %v497_v24  ;;  %v239_v31 = vmul.f32 %v1349_v28, %v1692_v42  ;;  %v468_v32 = vmul.f32 %v1369_v29, %v1692_v42  ;;  %v206_v33 = vpop.f32.mrb[13].mxu0  ;;  %v439_v34 = vpop.f32.mrb[13].mxu1 }
  0xf7   :  { %v1771_v35 = vmax.f32 %v270_v26, %v495_v27  ;;  %v237_v36 = vmul.f32 %v1692_v42, %v206_v33  ;;  %v466_v37 = vmul.f32 %v1692_v42, %v439_v34  ;;  %v1350_v38 = vpop.f32.mrb[14].mxu0  ;;  %v1370_v39 = vpop.f32.mrb[14].mxu1 }
  0xf8   :  { %v259_v40 = vadd.f32 %v1697_v43, %v239_v31  ;;  %v484_v41 = vadd.f32 %v1697_v43, %v468_v32  ;;  %v240_v44 = vmul.f32 %v1350_v38, %v1692_v42  ;;  %v469_v45 = vmul.f32 %v1370_v39, %v1692_v42  ;;  %v209_v47 = vpop.f32.mrb[15].mxu0  ;;  %v442_v48 = vpop.f32.mrb[15].mxu1 }
  0xf9   :  { %v257_v50 = vadd.f32 %v1697_v43, %v237_v36  ;;  %v482_v51 = vadd.f32 %v1697_v43, %v466_v37  ;;  %v238_v52 = vmul.f32 %v1692_v42, %v209_v47  ;;  %v467_v53 = vmul.f32 %v1692_v42, %v442_v48 }
  0xfa   :  { %v275_v55 = vmax.f32 %v259_v40, 0.0  ;;  %v500_v56 = vmax.f32 %v484_v41, 0.0  ;;  %v260_v57 = vadd.f32 %v1697_v43, %v240_v44  ;;  %v485_v58 = vadd.f32 %v1697_v43, %v469_v45 }
  0xfb   :  { %v273_v60 = vmax.f32 %v257_v50, 0.0  ;;  %v498_v61 = vmax.f32 %v482_v51, 0.0  ;;  %v258_v62 = vadd.f32 %v1697_v43, %v238_v52  ;;  %v483_v63 = vadd.f32 %v1697_v43, %v467_v53 }
  0xfc   :  { %v1787_v0 = vmax.f32 %v275_v55, %v500_v56  ;;  %v276_v1 = vmax.f32 %v260_v57, 0.0  ;;  %v501_v2 = vmax.f32 %v485_v58, 0.0 }
  0xfd   :  { %v1789_v3 = vmax.f32 %v273_v60, %v498_v61  ;;  %v274_v4 = vmax.f32 %v258_v62, 0.0  ;;  %v499_v5 = vmax.f32 %v483_v63, 0.0  ;;  %v1377_v6 = vpop.f32.mrb[16].mxu0  ;;  %v1397_v7 = vpop.f32.mrb[16].mxu1 }
  0xfe   :  { %v1791_v9 = vmax.f32 %v276_v1, %v501_v2  ;;  %v697_v10 = vmul.f32 %v1377_v6, %v1692_v42  ;;  %v938_v12 = vmul.f32 %v1397_v7, %v1692_v42  ;;  %v632_v13 = vpop.f32.mrb[17].mxu0  ;;  %v873_v14 = vpop.f32.mrb[17].mxu1 }
  0xff   :  { %v1795_v15 = vmax.f32 %v274_v4, %v499_v5  ;;  %v695_v17 = vmul.f32 %v1692_v42, %v632_v13  ;;  %v936_v18 = vmul.f32 %v1692_v42, %v873_v14  ;;  %v1378_v19 = vpop.f32.mrb[18].mxu0  ;;  %v1398_v20 = vpop.f32.mrb[18].mxu1 }
 0x100   :  { %v713_v23 = vadd.f32 %v1697_v43, %v697_v10  ;;  %v954_v24 = vadd.f32 %v1697_v43, %v938_v12  ;;  %v698_v26 = vmul.f32 %v1378_v19, %v1692_v42  ;;  %v939_v27 = vmul.f32 %v1398_v20, %v1692_v42  ;;  %v635_v28 = vpop.f32.mrb[19].mxu0  ;;  %v876_v29 = vpop.f32.mrb[19].mxu1 }
 0x101   :  { %v711_v31 = vadd.f32 %v1697_v43, %v695_v17  ;;  %v952_v32 = vadd.f32 %v1697_v43, %v936_v18  ;;  %v696_v33 = vmul.f32 %v1692_v42, %v635_v28  ;;  %v937_v34 = vmul.f32 %v1692_v42, %v876_v29 }
 0x102   :  { %v729_v36 = vmax.f32 %v713_v23, 0.0  ;;  %v970_v37 = vmax.f32 %v954_v24, 0.0  ;;  %v714_v38 = vadd.f32 %v1697_v43, %v698_v26  ;;  %v955_v39 = vadd.f32 %v1697_v43, %v939_v27 }
 0x103   :  { %v727_v40 = vmax.f32 %v711_v31, 0.0  ;;  %v968_v41 = vmax.f32 %v952_v32, 0.0  ;;  %v712_v44 = vadd.f32 %v1697_v43, %v696_v33  ;;  %v953_v45 = vadd.f32 %v1697_v43, %v937_v34 }
 0x104   :  { %v745_v47 = vmax.f32 %v1715_v8, %v729_v36  ;;  %v730_v48 = vmax.f32 %v714_v38, 0.0  ;;  %v971_v51 = vmax.f32 %v955_v39, 0.0 }
 0x105   :  { %v743_v50 = vmax.f32 %v1717_v11, %v727_v40  ;;  %v728_v52 = vmax.f32 %v712_v44, 0.0  ;;  %v969_v53 = vmax.f32 %v953_v45, 0.0  ;;  %v1381_v55 = vpop.f32.mrb[20].mxu0  ;;  %v1401_v56 = vpop.f32.mrb[20].mxu1 }
 0x106   :  { %v986_v57 = vmax.f32 %v745_v47, %v970_v37  ;;  %v746_v58 = vmax.f32 %v1719_v16, %v730_v48  ;;  %v701_v60 = vmul.f32 %v1381_v55, %v1692_v42  ;;  %v942_v61 = vmul.f32 %v1401_v56, %v1692_v42  ;;  %v648_v62 = vpop.f32.mrb[21].mxu0  ;;  %v889_v63 = vpop.f32.mrb[21].mxu1 }
 0x107   :  { %v984_v1 = vmax.f32 %v743_v50, %v968_v41  ;;  %v744_v8 = vmax.f32 %v1723_v21, %v728_v52  ;;  %v699_v2 = vmul.f32 %v1692_v42, %v648_v62  ;;  %v940_v11 = vmul.f32 %v1692_v42, %v889_v63  ;;  %v1382_v4 = vpop.f32.mrb[22].mxu0  ;;  %v1402_v5 = vpop.f32.mrb[22].mxu1 }
 0x108   :  { %v987_v6 = vmax.f32 %v746_v58, %v971_v51  ;;  %v717_v7 = vadd.f32 %v1697_v43, %v701_v60  ;;  %v958_v16 = vadd.f32 %v1697_v43, %v942_v61  ;;  %v651_v10 = vpop.f32.mrb[23].mxu0  ;;  %v892_v12 = vpop.f32.mrb[23].mxu1  ;;  %v702_v20 = vmul.f32 %v1382_v4, %v1692_v42 }
 0x109   :  { %v985_v13 = vmax.f32 %v744_v8, %v969_v53  ;;  %v715_v14 = vadd.f32 %v1697_v43, %v699_v2  ;;  %v956_v17 = vadd.f32 %v1697_v43, %v940_v11  ;;  %v1001_v21 = vsel %vm1000_vm4, %v984_v1, 0.0 }
 0x10a   :  { %v733_v18 = vmax.f32 %v717_v7, 0.0  ;;  %v974_v19 = vmax.f32 %v958_v16, 0.0  ;;  %v943_v27 = vmul.f32 %v1402_v5, %v1692_v42  ;;  %v718_v31 = vadd.f32 %v1697_v43, %v702_v20 }
 0x10b   :  { %v1002_v23 = vsel %vm1000_vm4, %v985_v13, 0.0  ;;  %v731_v24 = vmax.f32 %v715_v14, 0.0  ;;  %v972_v26 = vmax.f32 %v956_v17, 0.0  ;;  %v700_v32 = vmul.f32 %v1692_v42, %v651_v10 }
 0x10c   :  { %v1003_v28 = vadd.f32 %v1002_v23, %v1001_v21  ;;  %v749_v29 = vmax.f32 %v1739_v46, %v733_v18  ;;  %v1004_v33 = vsel %vm1000_vm4, %v986_v57, 0.0  ;;  %v959_v36 = vadd.f32 %v1697_v43, %v943_v27 }
 0x10d   :  { %v747_v34 = vmax.f32 %v1741_v49, %v731_v24  ;;  %v941_v37 = vmul.f32 %v1692_v42, %v892_v12  ;;  %v1385_v38 = vpop.f32.mrb[24].mxu0  ;;  %v1405_v39 = vpop.f32.mrb[24].mxu1  ;;  %v734_v44 = vmax.f32 %v718_v31, 0.0  ;;  %v716_v45 = vadd.f32 %v1697_v43, %v700_v32 }
 0x10e   :  { %v1005_v40 = vadd.f32 %v1004_v33, %v1003_v28  ;;  %v990_v41 = vmax.f32 %v749_v29, %v974_v19  ;;  %v664_v46 = vpop.f32.mrb[25].mxu0  ;;  %v905_v47 = vpop.f32.mrb[25].mxu1  ;;  %v1006_v48 = vsel %vm1000_vm4, %v987_v6, 0.0  ;;  %v705_v49 = vmul.f32 %v1385_v38, %v1692_v42 }
 0x10f   :  { %v988_v50 = vmax.f32 %v747_v34, %v972_v26  ;;  %v957_v51 = vadd.f32 %v1697_v43, %v941_v37  ;;  %v1386_v52 = vpop.f32.mrb[26].mxu0  ;;  %v1406_v53 = vpop.f32.mrb[26].mxu1  ;;  %v750_v56 = vmax.f32 %v1743_v54, %v734_v44  ;;  %v975_v57 = vmax.f32 %v959_v36, 0.0 }
 0x110   :  { %v1007_v55 = vadd.f32 %v1006_v48, %v1005_v40  ;;  %v732_v58 = vmax.f32 %v716_v45, 0.0  ;;  %v667_v60 = vpop.f32.mrb[27].mxu0  ;;  %v908_v61 = vpop.f32.mrb[27].mxu1  ;;  %v721_v1 = vadd.f32 %v1697_v43, %v705_v49  ;;  %v946_v8 = vmul.f32 %v1405_v39, %v1692_v42 }
 0x111   :  { %v1008_v62 = vsel %vm1000_vm4, %v988_v50, 0.0  ;;  %v973_v63 = vmax.f32 %v957_v51, 0.0  ;;  %v991_v11 = vmax.f32 %v750_v56, %v975_v57  ;;  %v703_v5 = vmul.f32 %v1692_v42, %v664_v46 }
 0x112   :  { %v1009_v2 = vadd.f32 %v1008_v62, %v1007_v55  ;;  %v748_v4 = vmax.f32 %v1747_v59, %v732_v58  ;;  %v737_v6 = vmax.f32 %v721_v1, 0.0  ;;  %v962_v54 = vadd.f32 %v1697_v43, %v946_v8 }
 0x113   :  { %v944_v7 = vmul.f32 %v1692_v42, %v905_v47  ;;  %v706_v16 = vmul.f32 %v1386_v52, %v1692_v42  ;;  %v1012_v10 = vsel %vm1000_vm4, %v990_v41, 0.0  ;;  %v719_v13 = vadd.f32 %v1697_v43, %v703_v5 }
 0x114   :  { %v989_v12 = vmax.f32 %v748_v4, %v973_v63  ;;  %v947_v14 = vmul.f32 %v1406_v53, %v1692_v42  ;;  %v753_v17 = vmax.f32 %v1763_v22, %v737_v6  ;;  %v978_v21 = vmax.f32 %v962_v54, 0.0 }
 0x115   :  { %v960_v59 = vadd.f32 %v1697_v43, %v944_v7  ;;  %v722_v18 = vadd.f32 %v1697_v43, %v706_v16  ;;  %v1389_v19 = vpop.f32.mrb[28].mxu0  ;;  %v1409_v20 = vpop.f32.mrb[28].mxu1  ;;  %v735_v24 = vmax.f32 %v719_v13, 0.0  ;;  %v704_v27 = vmul.f32 %v1692_v42, %v667_v60 }
 0x116   :  { %v1010_v23 = vsel %vm1000_vm4, %v989_v12, 0.0  ;;  %v963_v26 = vadd.f32 %v1697_v43, %v947_v14  ;;  %v680_v28 = vpop.f32.mrb[29].mxu0  ;;  %v921_v29 = vpop.f32.mrb[29].mxu1  ;;  %v994_v32 = vmax.f32 %v753_v17, %v978_v21  ;;  %v1014_v37 = vsel %vm1000_vm4, %v991_v11, 0.0 }
 0x117   :  { %v1011_v31 = vadd.f32 %v1010_v23, %v1009_v2  ;;  %v976_v33 = vmax.f32 %v960_v59, 0.0  ;;  %v738_v22 = vmax.f32 %v722_v18, 0.0  ;;  %v1390_v34 = vpop.f32.mrb[30].mxu0  ;;  %v1410_v36 = vpop.f32.mrb[30].mxu1  ;;  %v751_v38 = vmax.f32 %v1765_v25, %v735_v24 }
 0x118   :  { %v720_v39 = vadd.f32 %v1697_v43, %v704_v27  ;;  %v945_v40 = vmul.f32 %v1692_v42, %v908_v61  ;;  %v683_v41 = vpop.f32.mrb[31].mxu0  ;;  %v924_v44 = vpop.f32.mrb[31].mxu1  ;;  %v979_v47 = vmax.f32 %v963_v26, 0.0  ;;  %v709_v48 = vmul.f32 %v1389_v19, %v1692_v42 }
 0x119   :  { %v1013_v45 = vadd.f32 %v1012_v10, %v1011_v31  ;;  %v754_v46 = vmax.f32 %v1767_v30, %v738_v22  ;;  %v992_v50 = vmax.f32 %v751_v38, %v976_v33  ;;  %v950_v52 = vmul.f32 %v1409_v20, %v1692_v42 }
 0x11a   :  { %v736_v51 = vmax.f32 %v720_v39, 0.0  ;;  %v961_v49 = vadd.f32 %v1697_v43, %v945_v40  ;;  %v725_v55 = vadd.f32 %v1697_v43, %v709_v48  ;;  %v707_v56 = vmul.f32 %v1692_v42, %v680_v28 }
 0x11b   :  { %v1015_v53 = vadd.f32 %v1014_v37, %v1013_v45  ;;  %v995_v25 = vmax.f32 %v754_v46, %v979_v47  ;;  %v966_v30 = vadd.f32 %v1697_v43, %v950_v52  ;;  %v948_v1 = vmul.f32 %v1692_v42, %v921_v29 }
 0x11c   :  { %v752_v57 = vmax.f32 %v1771_v35, %v736_v51  ;;  %v977_v58 = vmax.f32 %v961_v49, 0.0  ;;  %v741_v60 = vmax.f32 %v725_v55, 0.0  ;;  %v723_v61 = vadd.f32 %v1697_v43, %v707_v56 }
 0x11d   :  { %v982_v63 = vmax.f32 %v966_v30, 0.0  ;;  %v710_v8 = vmul.f32 %v1390_v34, %v1692_v42  ;;  %v1023_v2 = vsel %vm1000_vm4, %v992_v50, 0.0  ;;  %v951_v5 = vmul.f32 %v1410_v36, %v1692_v42  ;;  %v1154_v50 = vpop.permute.xlu1 %1153 }
 0x11e   :  { %v993_v62 = vmax.f32 %v752_v57, %v977_v58  ;;  %v757_v11 = vmax.f32 %v1787_v0, %v741_v60  ;;  %v739_v4 = vmax.f32 %v723_v61, 0.0  ;;  %v964_v6 = vadd.f32 %v1697_v43, %v948_v1  ;;  %v1284_v58 = vld [vmem:[%s1921_s3 + $0x2] ss:$0 sm:$0xff]  ;;  %s1516_s3 = smov 104  }
 0x11f   :  { %v726_v54 = vadd.f32 %v1697_v43, %v710_v8  ;;  %v708_v7 = vmul.f32 %v1692_v42, %v683_v41  ;;  %v1026_v16 = vsel %vm1000_vm4, %v994_v32, 0.0  ;;  %v967_v0 = vadd.f32 %v1697_v43, %v951_v5 }
 0x120   :  { %v1024_v35 = vsel %vm1000_vm4, %v993_v62, 0.0  ;;  %v998_v12 = vmax.f32 %v757_v11, %v982_v63  ;;  %v755_v13 = vmax.f32 %v1789_v3, %v739_v4  ;;  %v980_v14 = vmax.f32 %v964_v6, 0.0 }
 0x121   :  { %v1025_v10 = vadd.f32 %v1024_v35, %v1023_v2  ;;  %v742_v17 = vmax.f32 %v726_v54, 0.0  ;;  %v724_v21 = vadd.f32 %v1697_v43, %v708_v7  ;;  %v1028_v59 = vsel %vm1000_vm4, %v995_v25, 0.0 }
 0x122   :  { %v949_v19 = vmul.f32 %v1692_v42, %v924_v44  ;;  %v996_v20 = vmax.f32 %v755_v13, %v980_v14  ;;  %v983_v24 = vmax.f32 %v967_v0, 0.0  ;;  %v1016_v3 = vrot.slane %v1015_v53, 4 }
 0x123   :  { %v1027_v18 = vadd.f32 %v1026_v16, %v1025_v10  ;;  %v758_v23 = vmax.f32 %v1791_v9, %v742_v17  ;;  %v740_v26 = vmax.f32 %v724_v21, 0.0  ;;  %v1034_v9 = vsel %vm1000_vm4, %v998_v12, 0.0 }
 0x124   :  { %v965_v28 = vadd.f32 %v1697_v43, %v949_v19  ;;  %v1030_v29 = vsel %vm1000_vm4, %v996_v20, 0.0  ;;  %v1017_v36 = vadd.f32 %v1016_v3, %v1015_v53  ;;  %v1127_v6 = vstv %s1420_s13 }
 0x125   :  { %v1029_v27 = vadd.f32 %v1028_v59, %v1027_v18  ;;  %v999_v31 = vmax.f32 %v758_v23, %v983_v24  ;;  %v756_v32 = vmax.f32 %v1795_v15, %v740_v26  ;;  %v1132_v15 = vpop.permute.xlu0 %1131 }
 0x126   :  { %v981_v22 = vmax.f32 %v965_v28, 0.0  ;;  %v1018_v38 = vrot.slane %v1017_v36, 2  ;;  %1421 = vpush %v1132_v15 }
 0x127   :  { %v1031_v33 = vadd.f32 %v1030_v29, %v1029_v27  ;;  %v1036_v40 = vsel %vm1000_vm4, %v999_v31, 0.0 }
 0x128   :  { %v997_v34 = vmax.f32 %v756_v32, %v981_v22  ;;  %v1019_v41 = vadd.f32 %v1018_v38, %v1017_v36 }
 0x129   :  { %v1143_v52 = vpop.permute.xlu0 %1142 }
 0x12a   :  { %v1032_v42 = vsel %vm1000_vm4, %v997_v34, 0.0  ;;  %v1020_v46 = vrot.slane %v1019_v41, 1  ;;  %1423 = vpush %v1143_v52 }
 0x12b   :  { %v1033_v37 = vadd.f32 %v1032_v42, %v1031_v33  ;;  %1425 = vpush %v1154_v50 }
 0x12c   :  { %v1021_v51 = vadd.f32 %v1020_v46, %v1019_v41 }
 0x12d   :  { %v1035_v39 = vadd.f32 %v1034_v9, %v1033_v37 }
 0x12e   :  { %v1022_v25 = vmul.f32 0.015625, %v1021_v51 }
 0x12f   :  { %v1037_v43 = vadd.f32 %v1036_v40, %v1035_v39 }
 0x131   :  { %v1038_v44 = vrot.slane %v1037_v43, 4 }
 0x133   :  { %v1039_v45 = vadd.f32 %v1038_v44, %v1037_v43 }
 0x135   :  { %v1040_v47 = vrot.slane %v1039_v45, 2 }
 0x137   :  { %v1041_v48 = vadd.f32 %v1040_v47, %v1039_v45 }
 0x139   :  { %v1042_v49 = vrot.slane %v1041_v48, 1 }
 0x13b   :  { %v1043_v53 = vadd.f32 %v1042_v49, %v1041_v48 }
 0x13d   :  { %v1044_v55 = vmul.f32 0.015625, %v1043_v53 }
 0x13f   :  { %v1046_v56 = vsel %vm1045_vm5, %v1022_v25, %v1044_v55 }
 0x140   :  { %v1047_v57 = vpack.c.bf16 %v1046_v56, %v1046_v56 }
 0x142   :  { %1416 = vmatmul.mubr.msk.bf16.vlgmr.msra.gmra.mrb[32].mxu0 %vm1000_vm4, %v1047_v57 }
 0x157   :  { %s1422_s14 = spop %1421 }
 0x158   :  { %v1134_v63 = vstv %s1422_s14 }
 0x15b   :  { %s1424_s15 = spop %1423 }
 0x15c   :  { %v1145_v60 = vstv %s1424_s15  ;;  %s1426_s18 = spop %1425 }
 0x15d   :  { %v1156_v4 = vstv %s1426_s18 }
 0x215   :  { %v1106_v30 = vpop.f32.mrb[32].mxu0 }
 0x216   :  { %v1895_v61 = vadd.f32 %v1284_v58, %v1106_v30  ;;  %v1417_v62 = vpop.f32.mrb[33].mxu0 }
 0x217   :  { %v1109_v1 = vpop.f32.mrb[34].mxu0 }
 0x218   :  { %v1136_v8 = vmul.f32 %v1134_v63, %v1895_v61  ;;  %v1147_v2 = vmul.f32 %v1145_v60, %v1895_v61  ;;  %v1418_v11 = vpop.f32.mrb[35].mxu0  ;;  %v1158_v5 = vmul.f32 %v1156_v4, %v1895_v61  ;;  %v1113_v35 = vsel %vm1112_vm6, %v1895_v61, -inf }
 0x219   :  { %v1129_v54 = vmul.f32 %v1127_v6, %v1895_v61 }
 0x21a   :  { %1149 = vrot.lane.b32.xlu0 %v1147_v2, %s1514_s19  ;;  %1138 = vrot.lane.b32.xlu1 %v1136_v8, %s1515_s20 }
 0x21e   :  { %1160 = vrot.lane.b32.xlu1 %v1158_v5, %s1516_s3 }
 0x242   :  { %1114 = vmax.xlane.f32.xlu1 %v1113_v35 }
 0x28c   :  { %v1139_v7 = vpop.permute.xlu1 %1138  ;;  %v1150_v10 = vpop.permute.xlu0 %1149 }
 0x28d   :  { %v1141_v16 = vadd.f32 %v1139_v7, %v1129_v54 }
 0x28f   :  { %v1152_v12 = vadd.f32 %v1150_v10, %v1141_v16 }
 0x290   :  { %v1161_v13 = vpop.permute.xlu1 %1160 }
 0x291   :  { %v1163_v14 = vadd.f32 %v1161_v13, %v1152_v12 }
 0x293   :  { %v1165_v17 = vsel %vm1164_vm7, %v1163_v14, -inf }
 0x294   :  { %1166 = vmax.xlane.f32.xlu0 %v1165_v17 }
 0x2cf   :  { %v1115_v0 = vpop.xlane.xlu1 %1114 }
 0x2d0   :  { %v1116_v21 = vsub.f32 %v1895_v61, %v1115_v0 }
 0x2d2   :  { %v1117_v59 = vmul.f32 1.442695, %v1116_v21 }
 0x2d4   :  { %1476 = vpow2.f32 %v1117_v59 }
 0x2de   :  { %v1477_v18 = vpop.eup %1476 }
 0x2df   :  { %v1119_v19 = vsel %vm1112_vm6, %v1477_v18, 0.0 }
 0x2e0   :  { %1120 = vadd.xlane.f32.xlu1 %v1119_v19 }
 0x321   :  { %v1167_v20 = vpop.xlane.xlu0 %1166 }
 0x322   :  { %v1168_v23 = vsub.f32 %v1163_v14, %v1167_v20 }
 0x324   :  { %v1169_v24 = vmul.f32 1.442695, %v1168_v23 }
 0x326   :  { %1478 = vpow2.f32 %v1169_v24 }
 0x330   :  { %v1479_v26 = vpop.eup %1478 }
 0x331   :  { %1172 = vrot.lane.b32.xlu0 %v1479_v26, %s1517_s21 }
 0x335   :  { %1186 = vrot.lane.b32.xlu0 %v1163_v14, %s1518_s22 }
 0x36d   :  { %v1121_v28 = vpop.xlane.xlu1 %1120 }
 0x36e   :  { %1480 = vrcp.f32 %v1121_v28 }
 0x378   :  { %v1481_v29 = vpop.eup %1480 }
 0x379   :  { %v1123_v31 = vmul.f32 %v1481_v29, %v1477_v18 }
 0x3a3   :  { %v1173_v27 = vpop.permute.xlu0 %1172 }
 0x3a4   :  { %v1176_v3 = vsel %vm1175_vm8, %v1173_v27, 0.0 }
 0x3a5   :  { %1177 = vadd.xlane.f32.xlu1 %v1176_v3 }
 0x3a7   :  { %v1187_v36 = vpop.permute.xlu0 %1186 }
 0x3b6   :  { %1182 = vrot.lane.b32.xlu1 %v1123_v31, %s1518_s22 }
 0x432   :  { %v1178_v32 = vpop.xlane.xlu1 %1177 }
 0x433   :  { %1482 = vrcp.f32 %v1178_v32 }
 0x436   :  { %v1183_v34 = vpop.permute.xlu1 %1182 }
 0x437   :  { %v1194_v42 = vsel %vm1193_vm9, %v1895_v61, %v1183_v34 }
 0x438   :  { %v1196_v9 = vsel %vm1195_vm10, %v1194_v42, %v1187_v36 }
 0x43d   :  { %v1483_v33 = vpop.eup %1482 }
 0x43e   :  { %v1180_v22 = vmul.f32 %v1483_v33, %v1479_v26 }
 0x440   :  { %1190 = vrot.lane.b32.xlu0 %v1180_v22, %s1519_s1 }
 0x4b2   :  { %v1191_v37 = vpop.permute.xlu0 %1190 }
 0x4b3   :  { %v1198_v38 = vsel %vm1197_vm11, %v1196_v9, %v1191_v37 }
 0x4b4   :  { %v1200_v39 = vsel %vm1199_vm12, %v1198_v38, 0.0 }
 0x4b5   :  { %1201 = vst [vmem:[#allocation2] sm:$0x3] %v1200_v39 }
 0x4b6   :  { %1495 = shalt.err (!%p1492_p4)
}
 0x4b7   :  { %s1496_s28 = scalar_lea.hbm %s1922_s4, 32 }
 0x4b8   :  { %p1497_p5 = scmp.ne.s32.totalorder %s1922_s4, %s1496_s28  ;;  %p1500_p6 = scmp.lt.u32.totalorder %s1496_s28, %s1922_s4 }
 0x4ba   :  { %p1502_p7 = pnand %p1500_p6, %p1497_p5 }
 0x4bc   :  { %1505 = shalt.err (!%p1502_p7)
}
 0x4bd   :  { %1211 = dma.vmem_to_hbm [thread:$0]  %s1209_s24, 32, %s1922_s4, [#allocation3]  }
 0x4be   :  { %1506 = dma.done.wait [#allocation3], 32  }
 0x4bf   :  { %1507 = vsyncadd [#allocation3], 4294967264 }
 0x4c0   :  { %1215 = vsyncpa [#allocation3], 1 }

</bundles_post_ra>
